<compile_context>
chip_gen: v6e
topology: v6e:2x2x1
jax: 0.10.0
libtpu: 0.0.40
codegen_flags: <defaults>
</compile_context>

<pallas_src>
import jax
import jax.numpy as jnp
from jax.experimental import pallas as pl
from jax.experimental.pallas import tpu as pltpu

LN_EPS = 1e-5      # PyTorch nn.LayerNorm default eps
LANE = 128         # TPU lane width


def _round_up(x, m):
    return (x + m - 1) // m * m


def _gelu_exact(x):
    # PyTorch nn.GELU default is the exact erf-based form.
    return 0.5 * x * (1.0 + jax.lax.erf(x * 0.7071067811865476))


def _layernorm(x, gamma, beta):
    # Normalize over the last (feature) axis, elementwise affine, f32 math.
    mean = jnp.mean(x, axis=-1, keepdims=True)
    centered = x - mean
    var = jnp.mean(centered * centered, axis=-1, keepdims=True)
    inv = jax.lax.rsqrt(var + LN_EPS)
    return centered * inv * gamma + beta


def mlp_kernel(x_ref, w1_ref, p1_ref, w2_ref, p2_ref, w3_ref, b3_ref, o_ref):
    """One batch tile: fc1 -> LN -> GELU -> fc2 -> LN -> GELU -> fc3 (padded)."""
    x = x_ref[...]

    # Packed per-layer params: row 0 = bias, row 1 = gamma, row 2 = beta.
    p1 = p1_ref[...].astype(jnp.float32)   # (3, d1)
    p2 = p2_ref[...].astype(jnp.float32)   # (3, d2)

    # fc1 + ln1 + gelu (f32 accumulation on the MXU, f32 elementwise epilogue)
    h = jnp.dot(x, w1_ref[...], preferred_element_type=jnp.float32)
    h = h + p1[0:1, :]
    h = _gelu_exact(_layernorm(h, p1[1:2, :], p1[2:3, :]))

    # fc2 + ln2 + gelu
    h = jnp.dot(h.astype(w2_ref.dtype), w2_ref[...],
                preferred_element_type=jnp.float32)
    h = h + p2[0:1, :]
    h = _gelu_exact(_layernorm(h, p2[1:2, :], p2[2:3, :]))

    # fc3 (output lane-padded to 128; padded columns are exactly zero)
    out = jnp.dot(h.astype(w3_ref.dtype), w3_ref[...],
                  preferred_element_type=jnp.float32)
    out = out + b3_ref[...].astype(jnp.float32)
    o_ref[...] = out.astype(o_ref.dtype)


def mlp_forward(x, params, *, tile_b=None, matmul_dtype=None):
    """Batch-tiled Pallas forward of the MLP.

    x:      (B, in_features)
    params: dict with w1,b1,g1,be1,w2,b2,g2,be2,w3,b3 (w stored as (in,out)).
    tile_b: batch tile (rounded to a multiple of 8, capped at 256).
    matmul_dtype: optional dtype (e.g. jnp.bfloat16) for x/weights at the
        kernel boundary on v6e/v7x; accumulation stays f32.
    """
    B, F = x.shape
    d1 = params["w1"].shape[-1]
    d2 = params["w2"].shape[-1]
    n_class = params["b3"].shape[-1]

    if tile_b is None:
        tile_b = min(256, _round_up(B, 8))
    tile_b = max(8, _round_up(tile_b, 8))
    B_pad = _round_up(B, tile_b)
    N_pad = _round_up(n_class, LANE)     # lane-dense output

    mm_dtype = x.dtype if matmul_dtype is None else matmul_dtype

    # --- wrapper-side layout plumbing (padding / packing, no extra compute) ---
    x_p = x if B_pad == B else jnp.pad(x, ((0, B_pad - B), (0, 0)))
    x_p = x_p.astype(mm_dtype)

    w1 = params["w1"].astype(mm_dtype)
    w2 = params["w2"].astype(mm_dtype)
    w3 = jnp.pad(params["w3"], ((0, 0), (0, N_pad - n_class))).astype(mm_dtype)
    b3 = jnp.pad(params["b3"], ((0, 0), (0, N_pad - n_class))).astype(jnp.float32)

    # Collapse the tiny per-layer vectors into one operand each (fewer DMAs).
    p1 = jnp.concatenate([params["b1"], params["g1"], params["be1"]],
                         axis=0).astype(jnp.float32)   # (3, d1)
    p2 = jnp.concatenate([params["b2"], params["g2"], params["be2"]],
                         axis=0).astype(jnp.float32)   # (3, d2)

    grid = (B_pad // tile_b,)

    operands = (x_p, w1, p1, w2, p2, w3, b3)
    nbytes = sum(int(a.size) * a.dtype.itemsize for a in operands)
    nbytes += B_pad * N_pad * jnp.dtype(x.dtype).itemsize
    cost = pl.CostEstimate(
        flops=2 * B_pad * (F * d1 + d1 * d2 + d2 * N_pad),
        transcendentals=2 * B_pad * (d1 + d2),
        bytes_accessed=nbytes,
    )

    out_p = pl.pallas_call(
        mlp_kernel,
        out_shape=jax.ShapeDtypeStruct((B_pad, N_pad), x.dtype),
        grid=grid,
        in_specs=[
            pl.BlockSpec((tile_b, F), lambda i: (i, 0)),   # x streams per tile
            pl.BlockSpec((F, d1),     lambda i: (0, 0)),   # weights stay resident
            pl.BlockSpec((3, d1),     lambda i: (0, 0)),
            pl.BlockSpec((d1, d2),    lambda i: (0, 0)),
            pl.BlockSpec((3, d2),     lambda i: (0, 0)),
            pl.BlockSpec((d2, N_pad), lambda i: (0, 0)),
            pl.BlockSpec((1, N_pad),  lambda i: (0, 0)),
        ],
        out_specs=pl.BlockSpec((tile_b, N_pad), lambda i: (i, 0)),
        compiler_params=pltpu.CompilerParams(
            dimension_semantics=("parallel",),          # megacore on v7x
            vmem_limit_bytes=32 * 1024 * 1024,          # safe on v7x's 64 MiB
        ),
        cost_estimate=cost,
    )(*operands)

    return out_p[:B, :n_class]


def init_params(key, in_features, n_class, dtype=jnp.float32):
    """Deterministic synthetic parameter init (PyTorch-Linear-like uniform)."""
    d1 = in_features // 4
    d2 = in_features // 16

    def linear(k, fan_in, fan_out):
        kw, kb = jax.random.split(k)
        bound = 1.0 / (fan_in ** 0.5)
        # stored as (fan_in, fan_out) == W^T so kernel does x @ W
        w = jax.random.uniform(kw, (fan_in, fan_out), dtype, -bound, bound)
        b = jax.random.uniform(kb, (1, fan_out), dtype, -bound, bound)
        return w, b

    k1, k2, k3 = jax.random.split(key, 3)
    w1, b1 = linear(k1, in_features, d1)
    w2, b2 = linear(k2, d1, d2)
    w3, b3 = linear(k3, d2, n_class)

    return {
        "w1": w1, "b1": b1,
        "g1": jnp.ones((1, d1), dtype), "be1": jnp.zeros((1, d1), dtype),
        "w2": w2, "b2": b2,
        "g2": jnp.ones((1, d2), dtype), "be2": jnp.zeros((1, d2), dtype),
        "w3": w3, "b3": b3,
    }


def mlp_reference(x, p):
    """Plain-JAX reference mirroring the PyTorch forward (for validation)."""
    h = x @ p["w1"] + p["b1"]
    h = _gelu_exact(_layernorm(h, p["g1"], p["be1"]))
    h = h @ p["w2"] + p["b2"]
    h = _gelu_exact(_layernorm(h, p["g2"], p["be2"]))
    return h @ p["w3"] + p["b3"]


if __name__ == "__main__":
    in_features = 256   # -> hidden dims 64 and 16
    n_class = 10
    batch = 8

    key = jax.random.PRNGKey(0)
    k_params, k_x = jax.random.split(key)
    params = init_params(k_params, in_features, n_class)
    x = jax.random.normal(k_x, (batch, in_features), jnp.float32)

    out = mlp_forward(x, params)           # f32 path (matches PyTorch numerics)
    out = jax.block_until_ready(out)

    ref = mlp_reference(x, params)
    assert out.shape == (batch, n_class)
    assert jnp.allclose(out, ref, atol=1e-5, rtol=1e-5), "mismatch vs reference"

    print("KERNEL_OK")
</pallas_src>

<mosaic_0001>
module attributes {stable_mosaic.version = 11 : i64} {
  func.func @mlp_kernel(%arg0: i32, %arg1: memref<8x256xf32, #tpu.memory_space<vmem>>, %arg2: memref<256x64xf32, #tpu.memory_space<vmem>>, %arg3: memref<3x64xf32, #tpu.memory_space<vmem>>, %arg4: memref<64x16xf32, #tpu.memory_space<vmem>>, %arg5: memref<3x16xf32, #tpu.memory_space<vmem>>, %arg6: memref<16x128xf32, #tpu.memory_space<vmem>>, %arg7: memref<1x128xf32, #tpu.memory_space<vmem>>, %arg8: memref<8x128xf32, #tpu.memory_space<vmem>>) attributes {dimension_semantics = [#tpu.dimension_semantics<parallel>], iteration_bounds = array<i64: 1>, scalar_prefetch = 0 : i64, scratch_operands = 0 : i64, tpu.core_type = #tpu.core_type<tc>, window_params = [{transform_indices = @transform_0, window_bounds = array<i64: 8, 256>}, {pipeline_mode = #tpu.pipeline_mode<synchronous>, transform_indices = @transform_1, window_bounds = array<i64: 256, 64>}, {pipeline_mode = #tpu.pipeline_mode<synchronous>, transform_indices = @transform_2, window_bounds = array<i64: 3, 64>}, {pipeline_mode = #tpu.pipeline_mode<synchronous>, transform_indices = @transform_3, window_bounds = array<i64: 64, 16>}, {pipeline_mode = #tpu.pipeline_mode<synchronous>, transform_indices = @transform_4, window_bounds = array<i64: 3, 16>}, {pipeline_mode = #tpu.pipeline_mode<synchronous>, transform_indices = @transform_5, window_bounds = array<i64: 16, 128>}, {pipeline_mode = #tpu.pipeline_mode<synchronous>, transform_indices = @transform_6, window_bounds = array<i64: 1, 128>}, {transform_indices = @transform_7, window_bounds = array<i64: 8, 128>}]} {
    %c0 = arith.constant 0 : index
    %c0_0 = arith.constant 0 : index
    %0 = vector.load %arg1[%c0, %c0_0] : memref<8x256xf32, #tpu.memory_space<vmem>>, vector<8x256xf32>
    %c0_1 = arith.constant 0 : index
    %c0_2 = arith.constant 0 : index
    %1 = vector.load %arg3[%c0_1, %c0_2] : memref<3x64xf32, #tpu.memory_space<vmem>>, vector<3x64xf32>
    %c0_3 = arith.constant 0 : index
    %c0_4 = arith.constant 0 : index
    %2 = vector.load %arg5[%c0_3, %c0_4] : memref<3x16xf32, #tpu.memory_space<vmem>>, vector<3x16xf32>
    %c0_5 = arith.constant 0 : index
    %c0_6 = arith.constant 0 : index
    %3 = vector.load %arg2[%c0_5, %c0_6] : memref<256x64xf32, #tpu.memory_space<vmem>>, vector<256x64xf32>
    %cst = arith.constant dense<0.000000e+00> : vector<8x64xf32>
    %4 = tpu.matmul %0, %3, %cst {dimension_numbers = #tpu.dot_dimension_numbers<[1], [0], [0], [1], [0, 0, 1, 1], [], []>} : vector<8x256xf32>, vector<256x64xf32>, vector<8x64xf32> -> vector<8x64xf32>
    %5 = vector.extract_strided_slice %1 {offsets = [0, 0], sizes = [1, 64], strides = [1, 1]} : vector<3x64xf32> to vector<1x64xf32>
    %6 = vector.broadcast %5 : vector<1x64xf32> to vector<8x64xf32>
    %7 = arith.addf %4, %6 : vector<8x64xf32>
    %8 = vector.extract_strided_slice %1 {offsets = [1, 0], sizes = [1, 64], strides = [1, 1]} : vector<3x64xf32> to vector<1x64xf32>
    %9 = vector.extract_strided_slice %1 {offsets = [2, 0], sizes = [1, 64], strides = [1, 1]} : vector<3x64xf32> to vector<1x64xf32>
    %cst_7 = arith.constant dense<0.000000e+00> : vector<8xf32>
    %10 = vector.multi_reduction <add>, %7, %cst_7 [1] : vector<8x64xf32> to vector<8xf32>
    %11 = vector.shape_cast %10 : vector<8xf32> to vector<8x1xf32>
    %cst_8 = arith.constant 6.400000e+01 : f32
    %12 = vector.broadcast %cst_8 : f32 to vector<8x1xf32>
    %13 = arith.divf %11, %12 : vector<8x1xf32>
    %14 = vector.broadcast %13 : vector<8x1xf32> to vector<8x64xf32>
    %15 = arith.subf %7, %14 : vector<8x64xf32>
    %16 = arith.mulf %15, %15 : vector<8x64xf32>
    %cst_9 = arith.constant dense<0.000000e+00> : vector<8xf32>
    %17 = vector.multi_reduction <add>, %16, %cst_9 [1] : vector<8x64xf32> to vector<8xf32>
    %18 = vector.shape_cast %17 : vector<8xf32> to vector<8x1xf32>
    %cst_10 = arith.constant 6.400000e+01 : f32
    %19 = vector.broadcast %cst_10 : f32 to vector<8x1xf32>
    %20 = arith.divf %18, %19 : vector<8x1xf32>
    %cst_11 = arith.constant 9.99999974E-6 : f32
    %21 = vector.broadcast %cst_11 : f32 to vector<8x1xf32>
    %22 = arith.addf %20, %21 : vector<8x1xf32>
    %23 = math.rsqrt %22 : vector<8x1xf32>
    %24 = vector.broadcast %23 : vector<8x1xf32> to vector<8x64xf32>
    %25 = arith.mulf %15, %24 : vector<8x64xf32>
    %26 = vector.broadcast %8 : vector<1x64xf32> to vector<8x64xf32>
    %27 = arith.mulf %25, %26 : vector<8x64xf32>
    %28 = vector.broadcast %9 : vector<1x64xf32> to vector<8x64xf32>
    %29 = arith.addf %27, %28 : vector<8x64xf32>
    %cst_12 = arith.constant 5.000000e-01 : f32
    %30 = vector.broadcast %cst_12 : f32 to vector<8x64xf32>
    %31 = arith.mulf %30, %29 : vector<8x64xf32>
    %cst_13 = arith.constant 0.707106769 : f32
    %32 = vector.broadcast %cst_13 : f32 to vector<8x64xf32>
    %33 = arith.mulf %29, %32 : vector<8x64xf32>
    %34 = math.erf %33 : vector<8x64xf32>
    %cst_14 = arith.constant 1.000000e+00 : f32
    %35 = vector.broadcast %cst_14 : f32 to vector<8x64xf32>
    %36 = arith.addf %35, %34 : vector<8x64xf32>
    %37 = arith.mulf %31, %36 : vector<8x64xf32>
    %c0_15 = arith.constant 0 : index
    %c0_16 = arith.constant 0 : index
    %38 = vector.load %arg4[%c0_15, %c0_16] : memref<64x16xf32, #tpu.memory_space<vmem>>, vector<64x16xf32>
    %cst_17 = arith.constant dense<0.000000e+00> : vector<8x16xf32>
    %39 = tpu.matmul %37, %38, %cst_17 {dimension_numbers = #tpu.dot_dimension_numbers<[1], [0], [0], [1], [0, 0, 1, 1], [], []>} : vector<8x64xf32>, vector<64x16xf32>, vector<8x16xf32> -> vector<8x16xf32>
    %40 = vector.extract_strided_slice %2 {offsets = [0, 0], sizes = [1, 16], strides = [1, 1]} : vector<3x16xf32> to vector<1x16xf32>
    %41 = vector.broadcast %40 : vector<1x16xf32> to vector<8x16xf32>
    %42 = arith.addf %39, %41 : vector<8x16xf32>
    %43 = vector.extract_strided_slice %2 {offsets = [1, 0], sizes = [1, 16], strides = [1, 1]} : vector<3x16xf32> to vector<1x16xf32>
    %44 = vector.extract_strided_slice %2 {offsets = [2, 0], sizes = [1, 16], strides = [1, 1]} : vector<3x16xf32> to vector<1x16xf32>
    %cst_18 = arith.constant dense<0.000000e+00> : vector<8xf32>
    %45 = vector.multi_reduction <add>, %42, %cst_18 [1] : vector<8x16xf32> to vector<8xf32>
    %46 = vector.shape_cast %45 : vector<8xf32> to vector<8x1xf32>
    %cst_19 = arith.constant 1.600000e+01 : f32
    %47 = vector.broadcast %cst_19 : f32 to vector<8x1xf32>
    %48 = arith.divf %46, %47 : vector<8x1xf32>
    %49 = vector.broadcast %48 : vector<8x1xf32> to vector<8x16xf32>
    %50 = arith.subf %42, %49 : vector<8x16xf32>
    %51 = arith.mulf %50, %50 : vector<8x16xf32>
    %cst_20 = arith.constant dense<0.000000e+00> : vector<8xf32>
    %52 = vector.multi_reduction <add>, %51, %cst_20 [1] : vector<8x16xf32> to vector<8xf32>
    %53 = vector.shape_cast %52 : vector<8xf32> to vector<8x1xf32>
    %cst_21 = arith.constant 1.600000e+01 : f32
    %54 = vector.broadcast %cst_21 : f32 to vector<8x1xf32>
    %55 = arith.divf %53, %54 : vector<8x1xf32>
    %cst_22 = arith.constant 9.99999974E-6 : f32
    %56 = vector.broadcast %cst_22 : f32 to vector<8x1xf32>
    %57 = arith.addf %55, %56 : vector<8x1xf32>
    %58 = math.rsqrt %57 : vector<8x1xf32>
    %59 = vector.broadcast %58 : vector<8x1xf32> to vector<8x16xf32>
    %60 = arith.mulf %50, %59 : vector<8x16xf32>
    %61 = vector.broadcast %43 : vector<1x16xf32> to vector<8x16xf32>
    %62 = arith.mulf %60, %61 : vector<8x16xf32>
    %63 = vector.broadcast %44 : vector<1x16xf32> to vector<8x16xf32>
    %64 = arith.addf %62, %63 : vector<8x16xf32>
    %cst_23 = arith.constant 5.000000e-01 : f32
    %65 = vector.broadcast %cst_23 : f32 to vector<8x16xf32>
    %66 = arith.mulf %65, %64 : vector<8x16xf32>
    %cst_24 = arith.constant 0.707106769 : f32
    %67 = vector.broadcast %cst_24 : f32 to vector<8x16xf32>
    %68 = arith.mulf %64, %67 : vector<8x16xf32>
    %69 = math.erf %68 : vector<8x16xf32>
    %cst_25 = arith.constant 1.000000e+00 : f32
    %70 = vector.broadcast %cst_25 : f32 to vector<8x16xf32>
    %71 = arith.addf %70, %69 : vector<8x16xf32>
    %72 = arith.mulf %66, %71 : vector<8x16xf32>
    %c0_26 = arith.constant 0 : index
    %c0_27 = arith.constant 0 : index
    %73 = vector.load %arg6[%c0_26, %c0_27] : memref<16x128xf32, #tpu.memory_space<vmem>>, vector<16x128xf32>
    %cst_28 = arith.constant dense<0.000000e+00> : vector<8x128xf32>
    %74 = tpu.matmul %72, %73, %cst_28 {dimension_numbers = #tpu.dot_dimension_numbers<[1], [0], [0], [1], [0, 0, 1, 1], [], []>} : vector<8x16xf32>, vector<16x128xf32>, vector<8x128xf32> -> vector<8x128xf32>
    %c0_29 = arith.constant 0 : index
    %c0_30 = arith.constant 0 : index
    %75 = vector.load %arg7[%c0_29, %c0_30] : memref<1x128xf32, #tpu.memory_space<vmem>>, vector<1x128xf32>
    %76 = vector.broadcast %75 : vector<1x128xf32> to vector<8x128xf32>
    %77 = arith.addf %74, %76 : vector<8x128xf32>
    %c0_31 = arith.constant 0 : index
    %c0_32 = arith.constant 0 : index
    %78 = vector.load %arg8[%c0_31, %c0_32] : memref<8x128xf32, #tpu.memory_space<vmem>>, vector<8x128xf32>
    tpu.vector_store %arg8[%c0_31, %c0_32], %77 {strides = array<i32>} : memref<8x128xf32, #tpu.memory_space<vmem>>, vector<8x128xf32>,
    return
  }
  func.func @transform_0(%arg0: i32) -> (i32, i32) {
    %c0_i32 = arith.constant 0 : i32
    %c0_i32_0 = arith.constant 0 : i32
    return %arg0, %c0_i32 : i32, i32
  }
  func.func @transform_1(%arg0: i32) -> (i32, i32) {
    %c0_i32 = arith.constant 0 : i32
    %c0_i32_0 = arith.constant 0 : i32
    %c0_i32_1 = arith.constant 0 : i32
    return %c0_i32, %c0_i32_0 : i32, i32
  }
  func.func @transform_2(%arg0: i32) -> (i32, i32) {
    %c0_i32 = arith.constant 0 : i32
    %c0_i32_0 = arith.constant 0 : i32
    %c0_i32_1 = arith.constant 0 : i32
    return %c0_i32, %c0_i32_0 : i32, i32
  }
  func.func @transform_3(%arg0: i32) -> (i32, i32) {
    %c0_i32 = arith.constant 0 : i32
    %c0_i32_0 = arith.constant 0 : i32
    %c0_i32_1 = arith.constant 0 : i32
    return %c0_i32, %c0_i32_0 : i32, i32
  }
  func.func @transform_4(%arg0: i32) -> (i32, i32) {
    %c0_i32 = arith.constant 0 : i32
    %c0_i32_0 = arith.constant 0 : i32
    %c0_i32_1 = arith.constant 0 : i32
    return %c0_i32, %c0_i32_0 : i32, i32
  }
  func.func @transform_5(%arg0: i32) -> (i32, i32) {
    %c0_i32 = arith.constant 0 : i32
    %c0_i32_0 = arith.constant 0 : i32
    %c0_i32_1 = arith.constant 0 : i32
    return %c0_i32, %c0_i32_0 : i32, i32
  }
  func.func @transform_6(%arg0: i32) -> (i32, i32) {
    %c0_i32 = arith.constant 0 : i32
    %c0_i32_0 = arith.constant 0 : i32
    %c0_i32_1 = arith.constant 0 : i32
    return %c0_i32, %c0_i32_0 : i32, i32
  }
  func.func @transform_7(%arg0: i32) -> (i32, i32) {
    %c0_i32 = arith.constant 0 : i32
    %c0_i32_0 = arith.constant 0 : i32
    return %arg0, %c0_i32 : i32, i32
  }
}

</mosaic_0001>

<bundles_post_ra>
// kernel: tpu_custom_call.1
= control target key start
LH: loop header
LB: loop body
LE: loop exit
PB: predicated region body
PF: predicated region fallthrough
CT: control target
= control target key end

     0   :  { %s704_s0 = inlined_call_operand.vmem [shape: f32[8,256], index: 0, kind: input, shape index: {}]   ;;  %s705_s1 = inlined_call_operand.vmem [shape: f32[256,64], index: 1, kind: input, shape index: {}]   ;;  %s706_s2 = inlined_call_operand.vmem [shape: f32[3,64], index: 2, kind: input, shape index: {}]   ;;  %s707_s3 = inlined_call_operand.vmem [shape: f32[64,16], index: 3, kind: input, shape index: {}]   ;;  %s708_s4 = inlined_call_operand.vmem [shape: f32[3,16], index: 4, kind: input, shape index: {}]   ;;  %s709_s5 = inlined_call_operand.vmem [shape: f32[16,128], index: 5, kind: input, shape index: {}]   ;;  %s710_s6 = inlined_call_operand.vmem [shape: f32[1,128], index: 6, kind: input, shape index: {}]   ;;  %s711_s7 = inlined_call_operand.hbm [shape: f32[8,128], index: 7, kind: output, shape index: {}]  }
   0x1   :  { %v62_v0 = vld [vmem:[%s705_s1 + $0xf8] sm:$0xff]  ;;  %v61_v2 = vld [vmem:[%s705_s1 + $0xf0] sm:$0xff]  ;;  %v60_v4 = vld [vmem:[%s705_s1 + $0xe8] sm:$0xff] }
   0x2   :  { %v46_v1 = vld [vmem:[%s705_s1 + $0x78] sm:$0xff]  ;;  %382 = vmatprep.subr.mxu0 %v62_v0  ;;  %v45_v3 = vld [vmem:[%s705_s1 + $0x70] sm:$0xff]  ;;  %v44_v5 = vld [vmem:[%s705_s1 + $0x68] sm:$0xff] }
   0x3   :  { %383 = vmatpush3.msra.mxu0 %v46_v1  ;;  %v59_v6 = vld [vmem:[%s705_s1 + $0xe0] sm:$0xff]  ;;  %v58_v8 = vld [vmem:[%s705_s1 + $0xd8] sm:$0xff]  ;;  %v57_v10 = vld [vmem:[%s705_s1 + $0xd0] sm:$0xff] }
   0x4   :  { %384 = vmatprep.subr.mxu0 %v61_v2  ;;  %v43_v7 = vld [vmem:[%s705_s1 + $0x60] sm:$0xff]  ;;  %v42_v9 = vld [vmem:[%s705_s1 + $0x58] sm:$0xff]  ;;  %v41_v11 = vld [vmem:[%s705_s1 + $0x50] sm:$0xff] }
   0x5   :  { %385 = vmatpush3.msra.mxu0 %v45_v3  ;;  %v56_v12 = vld [vmem:[%s705_s1 + $0xc8] sm:$0xff] }
   0x6   :  { %386 = vmatprep.subr.mxu0 %v60_v4  ;;  %v28_v13 = vld [vmem:[%s704_s0 + $0x8] sm:$0xff] }
   0x7   :  { %387 = vmatpush3.msra.mxu0 %v44_v5  ;;  %v40_v14 = vld [vmem:[%s705_s1 + $0x48] sm:$0xff]  ;;  %131 = vmatprep.mubr.f32.mxu0 %v28_v13 }
   0x8   :  { %388 = vmatprep.subr.mxu0 %v59_v6 }
   0x9   :  { %389 = vmatpush3.msra.mxu0 %v43_v7 }
   0xa   :  { %390 = vmatprep.subr.mxu0 %v58_v8 }
   0xb   :  { %391 = vmatpush3.msra.mxu0 %v42_v9 }
   0xc   :  { %392 = vmatprep.subr.mxu0 %v57_v10 }
   0xd   :  { %12 = vsyncpa [#allocation3], 0  ;;  %393 = vmatpush3.msra.mxu0 %v41_v11  ;;  %v55_v15 = vld [vmem:[%s705_s1 + $0xc0] sm:$0xff]  ;;  %v54_v17 = vld [vmem:[%s705_s1 + $0xb8] sm:$0xff]  ;;  %v63_v34 = vlaneseq  ;;  %vm137_vm0 = vcmask 523264   ;;  %v488_v50 = vmov 0.0  }
   0xe   :  { %394 = vmatprep.subr.mxu0 %v56_v12  ;;  %v39_v16 = vld [vmem:[%s705_s1 + $0x40] sm:$0xff]  ;;  %v38_v18 = vld [vmem:[%s705_s1 + $0x38] sm:$0xff]  ;;  %v53_v19 = vld [vmem:[%s705_s1 + $0xb0] sm:$0xff]  ;;  %429 = vmatprep.subr.mxu1 %v488_v50  ;;  %vm489_vm1 = vmmov 0   ;;  %vm252_vm2 = vcmask 130048   ;;  %s490_s20 = smov [#allocation2]  }
   0xf   :  { %395 = vmatpush3.msra.mxu0 %v40_v14  ;;  %v37_v20 = vld [vmem:[%s705_s1 + $0x30] sm:$0xff]  ;;  %v52_v21 = vld [vmem:[%s705_s1 + $0xa8] sm:$0xff]  ;;  %v51_v23 = vld [vmem:[%s705_s1 + $0xa0] sm:$0xff]  ;;  %v633_v35 = vshrl.u32 %v63_v34, 7  ;;  %445 = vmatprep.mubr.msk.f32.mxu1 %vm489_vm1, %v488_v50  ;;  %s371_s21 = sshll.u32 %s490_s20, 4  ;;  %s372_s21 = int_to_ptr.vmem [resolvable:$true] %s371_s21 }
  0x10   :  { %396 = vmatprep.subr.mxu0 %v55_v15  ;;  %v36_v22 = vld [vmem:[%s705_s1 + $0x28] sm:$0xff]  ;;  %v35_v24 = vld [vmem:[%s705_s1 + $0x20] sm:$0xff]  ;;  %v50_v25 = vld [vmem:[%s705_s1 + $0x98] sm:$0xff]  ;;  %s466_s22 = scalar_lea.vmem %s372_s21, 128  ;;  %p471_p1 = scmp.lt.s32.totalorder %s372_s21, %s372_s21 }
  0x11   :  { %397 = vmatpush3.msra.mxu0 %v39_v16  ;;  %v34_v26 = vld [vmem:[%s705_s1 + $0x18] sm:$0xff]  ;;  %v49_v27 = vld [vmem:[%s705_s1 + $0x90] sm:$0xff]  ;;  %v48_v29 = vld [vmem:[%s705_s1 + $0x88] sm:$0xff]  ;;  %v65_v36 = vsub.s32 0, %v633_v35  ;;  %v154_v61 = vsub.s32 1, %v633_v35  ;;  %v159_v62 = vsub.s32 2, %v633_v35  ;;  %p467_p0 = scmp.ne.s32.totalorder %s372_s21, %s466_s22  ;;  %p472_p2 = scmp.lt.s32.totalorder %s466_s22, %s466_s22 }
  0x12   :  { %398 = vmatprep.subr.mxu0 %v54_v17  ;;  %v33_v28 = vld [vmem:[%s705_s1 + $0x10] sm:$0xff]  ;;  %v32_v30 = vld [vmem:[%s705_s1 + $0x8] sm:$0xff]  ;;  %v47_v31 = vld [vmem:[%s705_s1 + $0x80] sm:$0xff] }
  0x13   :  { %399 = vmatpush3.msra.mxu0 %v38_v18  ;;  %v31_v32 = vld [vmem:[%s705_s1] sm:$0xff]  ;;  %v174_v49 = vld [vmem:[%s707_s3 + $0x38] sm:$0xff]  ;;  %v173_v51 = vld [vmem:[%s707_s3 + $0x30] sm:$0xff]  ;;  %p473_p3 = por %p472_p2, %p471_p1 }
  0x14   :  { %400 = vmatprep.subr.mxu0 %v53_v19  ;;  %v27_v33 = vld [vmem:[%s704_s0] sm:$0xff]  ;;  %430 = vmatpush3.msra.mxu1 %v174_v49  ;;  %v172_v52 = vld [vmem:[%s707_s3 + $0x28] sm:$0xff]  ;;  %v170_v54 = vld [vmem:[%s707_s3 + $0x18] sm:$0xff] }
  0x15   :  { %401 = vmatpush3.msra.mxu0 %v37_v20  ;;  %v29_v37 = vld [vmem:[%s706_s2] sm:$0x7]  ;;  %431 = vmatprep.subr.mxu1 %v488_v50  ;;  %v169_v55 = vld [vmem:[%s707_s3 + $0x10] sm:$0xff]  ;;  %v168_v56 = vld [vmem:[%s707_s3 + $0x8] sm:$0xff]  ;;  %p474_p4 = pnand %p473_p3, %p467_p0 }
  0x16   :  { %402 = vmatprep.subr.mxu0 %v52_v21  ;;  %v66_v39 = vrot.slane %v29_v37, %v65_v36  ;;  %432 = vmatpush3.msra.mxu1 %v173_v51  ;;  %v171_v53 = vld [vmem:[%s707_s3 + $0x20] sm:$0xff]  ;;  %v155_v63 = vrot.slane %v29_v37, %v154_v61  ;;  %v160_v1 = vrot.slane %v29_v37, %v159_v62  ;;  %v283_v21 = vld [vmem:[%s709_s5 + $0x8] sm:$0xff] }
  0x17   :  { %403 = vmatpush3.msra.mxu0 %v36_v22  ;;  %433 = vmatprep.subr.mxu1 %v488_v50  ;;  %v167_v57 = vld [vmem:[%s707_s3] sm:$0xff] }
  0x18   :  { %404 = vmatprep.subr.mxu0 %v51_v23  ;;  %434 = vmatpush3.msra.mxu1 %v172_v52  ;;  %v30_v10 = vld [vmem:[%s708_s4] sm:$0x7] }
  0x19   :  { %405 = vmatpush3.msra.mxu0 %v35_v24  ;;  %435 = vmatprep.subr.mxu1 %v488_v50  ;;  %v178_v11 = vrot.slane %v30_v10, %v65_v36  ;;  %v282_v22 = vld [vmem:[%s709_s5] sm:$0xff] }
  0x1a   :  { %406 = vmatprep.subr.mxu0 %v50_v25  ;;  %436 = vmatpush3.msra.mxu1 %v171_v53  ;;  %v380_v37 = vld [vmem:[%s710_s6] ss:$0 sm:$0xff] }
  0x1b   :  { %407 = vmatpush3.msra.mxu0 %v34_v26  ;;  %437 = vmatprep.subr.mxu1 %v488_v50  ;;  %v270_v26 = vrot.slane %v30_v10, %v154_v61 }
  0x1c   :  { %408 = vmatprep.subr.mxu0 %v49_v27  ;;  %438 = vmatpush3.msra.mxu1 %v170_v54 }
  0x1d   :  { %409 = vmatpush3.msra.mxu0 %v33_v28  ;;  %439 = vmatprep.subr.mxu1 %v488_v50  ;;  %v275_v28 = vrot.slane %v30_v10, %v159_v62 }
  0x1e   :  { %410 = vmatprep.subr.mxu0 %v48_v29  ;;  %440 = vmatpush3.msra.mxu1 %v169_v55 }
  0x1f   :  { %411 = vmatpush3.msra.mxu0 %v32_v30  ;;  %441 = vmatprep.subr.mxu1 %v488_v50 }
  0x20   :  { %412 = vmatprep.subr.mxu0 %v47_v31  ;;  %442 = vmatpush3.msra.mxu1 %v168_v56 }
  0x21   :  { %413 = vmatpush3.msra.mxu0 %v31_v32  ;;  %443 = vmatprep.subr.mxu1 %v488_v50 }
  0x22   :  { %132 = vmatmul.mubr.f32.vlgmr.msra.gmra.mxu0 %v27_v33  ;;  %444 = vmatpush3.msra.mxu1 %v167_v57 }
  0x23   :  { %448 = vmatprep.subr.mxu1 %v488_v50 }
  0xe2   :  { %v414_v38 = vpop.f32.mrf.mxu0 }
  0xe4   :  { %v415_v40 = vpop.f32.mrf.mxu0 }
  0xe5   :  { %v416_v41 = vadd.f32 %v415_v40, %v414_v38 }
  0xe7   :  { %v134_v42 = vadd.f32 %v416_v41, %v66_v39 }
  0xe9   :  { %v138_v43 = vsel %vm137_vm0, %v134_v42, 0.0 }
  0xea   :  { %139 = vadd.xlane.f32.xlu0 %v138_v43 }
 0x173   :  { %v140_v44 = vpop.xlane.xlu0 %139 }
 0x174   :  { %v142_v45 = vmul.f32 0.015625, %v140_v44 }
 0x176   :  { %v143_v46 = vsub.f32 %v134_v42, %v142_v45 }
 0x178   :  { %v144_v47 = vmul.f32 %v143_v46, %v143_v46 }
 0x17a   :  { %v145_v48 = vsel %vm137_vm0, %v144_v47, 0.0 }
 0x17b   :  { %146 = vadd.xlane.f32.xlu0 %v145_v48 }
 0x204   :  { %v147_v58 = vpop.xlane.xlu0 %146 }
 0x205   :  { %v148_v59 = vmul.f32 0.015625, %v147_v58 }
 0x207   :  { %v149_v60 = vadd.f32 1e-05, %v148_v59 }
 0x209   :  { %458 = vrsqrt.f32 %v149_v60 }
 0x216   :  { %v459_v0 = vpop.eup %458 }
 0x217   :  { %v151_v2 = vmul.f32 %v459_v0, %v143_v46 }
 0x219   :  { %v156_v3 = vmul.f32 %v155_v63, %v151_v2 }
 0x21b   :  { %v161_v4 = vadd.f32 %v160_v1, %v156_v3 }
 0x21d   :  { %v163_v5 = vmul.f32 0.70710677, %v161_v4  ;;  %v162_v7 = vmul.f32 0.5, %v161_v4 }
 0x21f   :  { %460 = verf.f32 %v163_v5 }
 0x22c   :  { %v461_v6 = vpop.eup %460 }
 0x22d   :  { %v165_v8 = vadd.f32 1.0, %v461_v6 }
 0x22f   :  { %v166_v9 = vmul.f32 %v165_v8, %v162_v7 }
 0x231   :  { %446 = vmatmul.mubr.msk.f32.vlgmr.msra.gmra.mxu1 %vm137_vm0, %v166_v9 }
 0x232   :  { %452 = vmatprep.mubr.msk.f32.mxu1 %vm489_vm1, %v488_v50  ;;  %449 = vmatpush3.msra.mxu1 %v283_v21 }
 0x233   :  { %450 = vmatprep.subr.mxu1 %v488_v50 }
 0x234   :  { %451 = vmatpush3.msra.mxu1 %v282_v22 }
 0x2f1   :  { %v248_v12 = vpop.f32.mrf.mxu1 }
 0x2f2   :  { %v249_v13 = vadd.f32 %v248_v12, %v178_v11 }
 0x2f3   :  { %v447_v14 = vpop.f32.mrf.mxu1 }
 0x2f4   :  { %v253_v15 = vsel %vm252_vm2, %v249_v13, 0.0 }
 0x2f5   :  { %254 = vadd.xlane.f32.xlu1 %v253_v15 }
 0x37e   :  { %v255_v16 = vpop.xlane.xlu1 %254 }
 0x37f   :  { %v257_v17 = vmul.f32 0.0625, %v255_v16 }
 0x381   :  { %v258_v18 = vsub.f32 %v249_v13, %v257_v17 }
 0x383   :  { %v259_v19 = vmul.f32 %v258_v18, %v258_v18 }
 0x385   :  { %v260_v20 = vsel %vm252_vm2, %v259_v19, 0.0 }
 0x386   :  { %261 = vadd.xlane.f32.xlu1 %v260_v20 }
 0x40f   :  { %v262_v23 = vpop.xlane.xlu1 %261 }
 0x410   :  { %v263_v24 = vmul.f32 0.0625, %v262_v23 }
 0x412   :  { %v264_v25 = vadd.f32 1e-05, %v263_v24 }
 0x414   :  { %462 = vrsqrt.f32 %v264_v25 }
 0x421   :  { %v463_v27 = vpop.eup %462 }
 0x422   :  { %v266_v29 = vmul.f32 %v463_v27, %v258_v18 }
 0x424   :  { %v271_v30 = vmul.f32 %v270_v26, %v266_v29 }
 0x426   :  { %v276_v31 = vadd.f32 %v275_v28, %v271_v30 }
 0x428   :  { %v278_v32 = vmul.f32 0.70710677, %v276_v31  ;;  %v277_v34 = vmul.f32 0.5, %v276_v31 }
 0x42a   :  { %464 = verf.f32 %v278_v32 }
 0x437   :  { %v465_v33 = vpop.eup %464 }
 0x438   :  { %v280_v35 = vadd.f32 1.0, %v465_v33 }
 0x43a   :  { %v281_v36 = vmul.f32 %v280_v35, %v277_v34 }
 0x43c   :  { %453 = vmatmul.mubr.msk.f32.vlgmr.msra.gmra.mxu1 %vm252_vm2, %v281_v36 }
 0x4fc   :  { %v360_v38 = vpop.f32.mrf.mxu1 }
 0x4fd   :  { %v361_v39 = vadd.f32 %v380_v37, %v360_v38 }
 0x4fe   :  { %v454_v40 = vpop.f32.mrf.mxu1 }
 0x4ff   :  { %364 = vst [vmem:[#allocation2] sm:$0xff] %v361_v39 }
 0x500   :  { %477 = shalt.err (!%p474_p4)
}
 0x501   :  { %374 = dma.vmem_to_hbm [thread:$0]  %s372_s21, 128, %s711_s7, [#allocation3]  }
 0x502   :  { %486 = dma.done.wait [#allocation3], 128  }
 0x503   :  { %487 = vsyncadd [#allocation3], 4294967168 }
 0x504   :  { %378 = vsyncpa [#allocation3], 1 }

</bundles_post_ra>
